<compile_context>
chip_gen: v7x
topology: tpu7x:2x2x1
jax: 0.10.0
libtpu: 0.0.40
codegen_flags: <defaults>
</compile_context>

<pallas_src>
import math

import jax
import jax.numpy as jnp
from jax.experimental import pallas as pl
from jax.experimental.pallas import tpu as pltpu


# ----------------------------- kernel body -----------------------------------


def _expert_affine_kernel(x_ref, a_ref, b_ref, o_ref):
    # x_ref: (tb, C, L_in or tk) f32    a_ref: (tk, tn) bf16
    # b_ref: (1, tn) f32                o_ref: (tb, C, tn) f32 (accumulator)
    k = pl.program_id(3)
    tb, ch, xk = x_ref.shape
    tk, tn = a_ref.shape

    @pl.when(k == 0)
    def _init():
        # Seed the (k-invariant) output block with the bias; K loop accumulates.
        o_ref[...] = jnp.broadcast_to(b_ref[...], o_ref.shape)

    if xk == tk:
        xs = x_ref[...]                    # x block already is the K chunk
    else:
        off = pl.multiple_of(k * tk, tk)   # x is K-resident: slice the chunk
        xs = x_ref[:, :, pl.ds(off, tk)]

    # Single MXU call with M = tb*C (instead of tb small M=C matmuls).
    x2d = xs.reshape(tb * ch, tk).astype(jnp.bfloat16)
    o_ref[...] += jnp.dot(
        x2d, a_ref[...], preferred_element_type=jnp.float32
    ).reshape(tb, ch, tn)


# --------------------------- tiling / planning --------------------------------


def _aligned_divisor(dim, target, align):
    """Largest divisor of `dim` that is a multiple of `align` and <= target;
    falls back to the full dim (always a legal block extent)."""
    if dim <= target:
        return dim
    t = (target // align) * align
    while t >= align:
        if dim % t == 0:
            return t
        t -= align
    return dim


def _plan_tiles(B, C, Lin, Lout, tb_target, tk_target, tn_target, budget):
    """Pick (tb, tk, tn, x_resident, vmem_footprint_bytes)."""
    tn = _aligned_divisor(Lout, tn_target, 128)
    tk = _aligned_divisor(Lin, tk_target, 128)
    tb_cap = B if tb_target is None else max(1, min(tb_target, B))
    tb_cands = [d for d in range(B, 0, -1) if B % d == 0 and d <= tb_cap]

    def fp(tb, x_klen, tk_, tn_):
        x_buf = tb * C * x_klen * 4          # f32 x block
        a_buf = tk_ * tn_ * 2                # bf16 A block
        b_buf = tn_ * 4
        o_buf = tb * C * tn_ * 4             # f32 output/accumulator block
        return 2 * (x_buf + a_buf + b_buf + o_buf)   # double-buffered

    # Preferred: x resident across the whole L_in (x read from HBM once).
    for tb in tb_cands:
        f = fp(tb, Lin, tk, tn)
        if f <= budget:
            return tb, tk, tn, True, f
    # Fallback: K-stream x (re-read per L_out tile).
    for tb in tb_cands:
        f = fp(tb, tk, tk, tn)
        if f <= budget:
            return tb, tk, tn, False, f
    # Last resort: smallest tb, shrink tn / tk toward 128-aligned divisors.
    tb = tb_cands[-1]
    changed = True
    while fp(tb, tk, tk, tn) > budget and changed:
        changed = False
        if tn > 128:
            new_tn = _aligned_divisor(Lout, max(128, tn // 2), 128)
            if new_tn < tn:
                tn, changed = new_tn, True
                continue
        if tk > 128:
            new_tk = _aligned_divisor(Lin, max(128, tk // 2), 128)
            if new_tk < tk:
                tk, changed = new_tk, True
    return tb, tk, tn, False, fp(tb, tk, tk, tn)


# ------------------------------- wrapper --------------------------------------


def fft_expand_bigconv1d_pallas(x, A, b, *, tb_target=None, tk_target=1024,
                                tn_target=1024, vmem_budget=40 * 1024 * 1024):
    """x: (B, E, C, L_in) f32; A: (E, L_in, L_out) bf16; b: (E, L_out) f32."""
    Bsz, E, C, Lin = x.shape
    assert A.shape[0] == E and A.shape[1] == Lin
    Lout = A.shape[-1]

    tb, tk, tn, x_resident, footprint = _plan_tiles(
        Bsz, C, Lin, Lout, tb_target, tk_target, tn_target, vmem_budget)
    nb, nn, nk = Bsz // tb, Lout // tn, Lin // tk

    b3 = b.reshape(E, 1, Lout).astype(jnp.float32)

    x_klen = Lin if x_resident else tk
    if x_resident:
        x_index = lambda e, bi, ni, ki: (bi, e, 0, 0)
    else:
        x_index = lambda e, bi, ni, ki: (bi, e, 0, ki)

    # Actual HBM traffic given this blocking (x once if resident, A nb times).
    x_bytes = x.size * x.dtype.itemsize * (1 if x_resident else nn)
    a_bytes = A.size * A.dtype.itemsize * nb
    o_bytes = Bsz * E * C * Lout * 4
    cost = pl.CostEstimate(
        flops=2 * Bsz * E * C * Lin * Lout,
        transcendentals=0,
        bytes_accessed=x_bytes + a_bytes + b3.size * 4 * nb + o_bytes,
    )

    # Derived scoped-VMEM limit: enough for the double-buffered blocks plus
    # headroom, and comfortably under v7x's 64 MiB physical VMEM.
    vmem_limit = int(min(56 << 20, max(32 << 20, footprint + (8 << 20))))

    return pl.pallas_call(
        _expert_affine_kernel,
        out_shape=jax.ShapeDtypeStruct((Bsz, E, C, Lout), jnp.float32),
        grid_spec=pltpu.PrefetchScalarGridSpec(
            num_scalar_prefetch=0,
            # E leads (megacore splits experts across TCs); reduction axis last.
            grid=(E, nb, nn, nk),
            in_specs=[
                # native (B, E, C, L_in) layout; E squeezed out of the block.
                pl.BlockSpec((tb, None, C, x_klen), x_index),
                pl.BlockSpec((None, tk, tn), lambda e, bi, ni, ki: (e, ki, ni)),
                pl.BlockSpec((None, 1, tn), lambda e, bi, ni, ki: (e, 0, ni)),
            ],
            out_specs=pl.BlockSpec((tb, None, C, tn),
                                   lambda e, bi, ni, ki: (bi, e, 0, ni)),
        ),
        compiler_params=pltpu.CompilerParams(
            dimension_semantics=("parallel", "parallel", "parallel", "arbitrary"),
            vmem_limit_bytes=vmem_limit,
        ),
        cost_estimate=cost,
    )(x, A, b3)


# ----------------------- parameter folding & reference ------------------------


def build_affine_params(weight, bias_c, input_len, output_len,
                        *, param_dtype=jnp.bfloat16):
    """Fold the FFT filter into an equivalent real affine map (one-time setup).

    weight, bias_c: (E, freq_len) complex64
    returns A: (E, L_in, L_out) param_dtype, b: (E, L_out) f32, pad_len, time_len
    """
    pad_len = max(math.floor((input_len + output_len - 1) / 100), 1)
    time_len = input_len + output_len - 1 + 2 * pad_len
    start = time_len - output_len - pad_len  # slice [..., -L_out-pad : -pad]

    # impulse responses of the full pad -> rfft -> (*W) -> irfft -> slice chain
    imp = jnp.eye(input_len, dtype=jnp.float32)
    imp_p = jnp.pad(imp, ((0, 0), (pad_len, output_len - 1 + pad_len)))
    spec = jnp.fft.rfft(imp_p, axis=-1)                                  # (L_in, F)
    resp = jnp.fft.irfft(spec[None, :, :] * weight[:, None, :],
                         n=time_len, axis=-1)                            # (E, L_in, T)
    A = resp[..., start:start + output_len].astype(param_dtype)          # (E, L_in, L_out)
    b = jnp.fft.irfft(bias_c, n=time_len, axis=-1)[
        :, start:start + output_len].astype(jnp.float32)                 # (E, L_out)
    return A, b, pad_len, time_len


def reference_forward(x, weight, bias_c, pad_len, time_len, output_len):
    """Direct JAX transcription of the PyTorch forward (rank_experts=None)."""
    xp = jnp.pad(x, ((0, 0), (0, 0), (0, 0),
                     (pad_len, output_len - 1 + pad_len)))
    X = jnp.fft.rfft(xp, axis=-1)
    X = X * weight[None, :, None, :] + bias_c[None, :, None, :]
    y = jnp.fft.irfft(X, n=time_len, axis=-1)
    return y[..., -output_len - pad_len:-pad_len]


# --------------------------------- demo ---------------------------------------


if __name__ == "__main__":
    B, E, C = 2, 4, 8
    input_len, output_len = 256, 256
    pad_len0 = max((input_len + output_len - 1) // 100, 1)
    time_len0 = input_len + output_len - 1 + 2 * pad_len0
    freq_len = time_len0 // 2 + 1

    key = jax.random.PRNGKey(0)
    kx, kwr, kwi, kbr, kbi = jax.random.split(key, 5)
    x = jax.random.normal(kx, (B, E, C, input_len), dtype=jnp.float32)

    # Module __init__ gives weight (1,E,1,F) with weight[...,0]=1, bias zeros.
    # Add a deterministic random perturbation so the kernel path is non-trivial.
    weight = jnp.zeros((E, freq_len), dtype=jnp.complex64).at[:, 0].set(1.0)
    weight = weight + 0.5 * (jax.random.normal(kwr, (E, freq_len))
                             + 1j * jax.random.normal(kwi, (E, freq_len))
                             ).astype(jnp.complex64)
    bias_c = 0.1 * (jax.random.normal(kbr, (E, freq_len))
                    + 1j * jax.random.normal(kbi, (E, freq_len))
                    ).astype(jnp.complex64)

    A, b, pad_len, time_len = build_affine_params(weight, bias_c,
                                                  input_len, output_len)
    y_ref = reference_forward(x, weight, bias_c, pad_len, time_len, output_len)

    # Small-tile config: exercises multi-K accumulation, L_out tiling, the
    # resident-x in-kernel K slice, and the bias init (grid = (4, 1, 2, 2)).
    y_small = jax.block_until_ready(
        fft_expand_bigconv1d_pallas(x, A, b, tk_target=128, tn_target=128))
    # Default config: full-extent tiles, A and x streamed once (grid (4,1,1,1)).
    y_big = jax.block_until_ready(fft_expand_bigconv1d_pallas(x, A, b))

    for y in (y_small, y_big):
        assert y.shape == (B, E, C, output_len), y.shape
        err = float(jnp.max(jnp.abs(y - y_ref)))
        # bf16 operands (f32 accumulation) -> ~1e-3..1e-2 abs error at this scale.
        assert jnp.allclose(y, y_ref, atol=2e-2, rtol=2e-2), err
    print("KERNEL_OK")
</pallas_src>

<mosaic_0001>
module attributes {stable_mosaic.version = 11 : i64} {
  func.func @_expert_affine_kernel(%arg0: i32, %arg1: i32, %arg2: i32, %arg3: i32, %arg4: memref<2x1x8x256xf32, #tpu.memory_space<vmem>>, %arg5: memref<1x128x128xbf16, #tpu.memory_space<vmem>>, %arg6: memref<1x1x128xf32, #tpu.memory_space<vmem>>, %arg7: memref<2x1x8x128xf32, #tpu.memory_space<vmem>>) attributes {dimension_semantics = [#tpu.dimension_semantics<parallel>, #tpu.dimension_semantics<parallel>, #tpu.dimension_semantics<parallel>, #tpu.dimension_semantics<arbitrary>], iteration_bounds = array<i64: 4, 1, 2, 2>, scalar_prefetch = 0 : i64, scratch_operands = 0 : i64, tpu.core_type = #tpu.core_type<tc>, window_params = [{transform_indices = @transform_0, window_bounds = array<i64: 2, 1, 8, 256>}, {transform_indices = @transform_1, window_bounds = array<i64: 1, 128, 128>}, {transform_indices = @transform_2, window_bounds = array<i64: 1, 1, 128>}, {transform_indices = @transform_3, window_bounds = array<i64: 2, 1, 8, 128>}]} {
    %c0_i32 = arith.constant 0 : i32
    %0 = arith.cmpi eq, %arg3, %c0_i32 : i32
    %1 = arith.extui %0 : i1 to i32
    %c0_i32_0 = arith.constant 0 : i32
    %2 = arith.cmpi ne, %1, %c0_i32_0 : i32
    scf.if %2 {
      %c0_14 = arith.constant 0 : index
      %c0_15 = arith.constant 0 : index
      %c0_16 = arith.constant 0 : index
      %20 = vector.load %arg6[%c0_14, %c0_15, %c0_16] : memref<1x1x128xf32, #tpu.memory_space<vmem>>, vector<1x1x128xf32>
      %21 = vector.shape_cast %20 : vector<1x1x128xf32> to vector<1x128xf32>
      %22 = vector.shape_cast %21 : vector<1x128xf32> to vector<1x1x128xf32>
      %23 = vector.broadcast %22 : vector<1x1x128xf32> to vector<2x8x128xf32>
      %c0_17 = arith.constant 0 : index
      %c0_18 = arith.constant 0 : index
      %c0_19 = arith.constant 0 : index
      %c0_20 = arith.constant 0 : index
      %24 = vector.load %arg7[%c0_17, %c0_18, %c0_19, %c0_20] : memref<2x1x8x128xf32, #tpu.memory_space<vmem>>, vector<2x1x8x128xf32>
      %25 = vector.shape_cast %24 : vector<2x1x8x128xf32> to vector<2x8x128xf32>
      %26 = vector.shape_cast %23 : vector<2x8x128xf32> to vector<2x1x8x128xf32>
      tpu.vector_store %arg7[%c0_17, %c0_18, %c0_19, %c0_20], %26 {strides = array<i32>} : memref<2x1x8x128xf32, #tpu.memory_space<vmem>>, vector<2x1x8x128xf32>,
    } else {
    }
    %c128_i32 = arith.constant 128 : i32
    %3 = arith.muli %arg3, %c128_i32 : i32
    %4 = tpu.assume_multiple %3, 128 : i32
    %c0 = arith.constant 0 : index
    %c0_1 = arith.constant 0 : index
    %c0_2 = arith.constant 0 : index
    %5 = arith.index_cast %4 : i32 to index
    %6 = vector.load %arg4[%c0, %c0_1, %c0_2, %5] : memref<2x1x8x256xf32, #tpu.memory_space<vmem>>, vector<2x1x8x128xf32>
    %7 = vector.shape_cast %6 : vector<2x1x8x128xf32> to vector<2x8x128xf32>
    %8 = vector.shape_cast %7 : vector<2x8x128xf32> to vector<16x128xf32>
    %9 = arith.truncf %8 : vector<16x128xf32> to vector<16x128xbf16>
    %c0_3 = arith.constant 0 : index
    %c0_4 = arith.constant 0 : index
    %c0_5 = arith.constant 0 : index
    %c0_6 = arith.constant 0 : index
    %10 = vector.load %arg7[%c0_3, %c0_4, %c0_5, %c0_6] : memref<2x1x8x128xf32, #tpu.memory_space<vmem>>, vector<2x1x8x128xf32>
    %11 = vector.shape_cast %10 : vector<2x1x8x128xf32> to vector<2x8x128xf32>
    %c0_7 = arith.constant 0 : index
    %c0_8 = arith.constant 0 : index
    %c0_9 = arith.constant 0 : index
    %12 = vector.load %arg5[%c0_7, %c0_8, %c0_9] : memref<1x128x128xbf16, #tpu.memory_space<vmem>>, vector<1x128x128xbf16>
    %13 = vector.shape_cast %12 : vector<1x128x128xbf16> to vector<128x128xbf16>
    %cst = arith.constant dense<0.000000e+00> : vector<16x128xf32>
    %14 = tpu.matmul %9, %13, %cst {dimension_numbers = #tpu.dot_dimension_numbers<[1], [0], [0], [1], [0, 0, 1, 1], [], []>} : vector<16x128xbf16>, vector<128x128xbf16>, vector<16x128xf32> -> vector<16x128xf32>
    %15 = vector.shape_cast %14 : vector<16x128xf32> to vector<2x8x128xf32>
    %16 = arith.addf %11, %15 : vector<2x8x128xf32>
    %c0_10 = arith.constant 0 : index
    %c0_11 = arith.constant 0 : index
    %c0_12 = arith.constant 0 : index
    %c0_13 = arith.constant 0 : index
    %17 = vector.load %arg7[%c0_10, %c0_11, %c0_12, %c0_13] : memref<2x1x8x128xf32, #tpu.memory_space<vmem>>, vector<2x1x8x128xf32>
    %18 = vector.shape_cast %17 : vector<2x1x8x128xf32> to vector<2x8x128xf32>
    %19 = vector.shape_cast %16 : vector<2x8x128xf32> to vector<2x1x8x128xf32>
    tpu.vector_store %arg7[%c0_10, %c0_11, %c0_12, %c0_13], %19 {strides = array<i32>} : memref<2x1x8x128xf32, #tpu.memory_space<vmem>>, vector<2x1x8x128xf32>,
    return
  }
  func.func @transform_0(%arg0: i32, %arg1: i32, %arg2: i32, %arg3: i32) -> (i32, i32, i32, i32) {
    %c0_i32 = arith.constant 0 : i32
    %c0_i32_0 = arith.constant 0 : i32
    %c0_i32_1 = arith.constant 0 : i32
    return %arg1, %arg0, %c0_i32, %c0_i32_0 : i32, i32, i32, i32
  }
  func.func @transform_1(%arg0: i32, %arg1: i32, %arg2: i32, %arg3: i32) -> (i32, i32, i32) {
    %c0_i32 = arith.constant 0 : i32
    return %arg0, %arg3, %arg2 : i32, i32, i32
  }
  func.func @transform_2(%arg0: i32, %arg1: i32, %arg2: i32, %arg3: i32) -> (i32, i32, i32) {
    %c0_i32 = arith.constant 0 : i32
    %c0_i32_0 = arith.constant 0 : i32
    return %arg0, %c0_i32, %arg2 : i32, i32, i32
  }
  func.func @transform_3(%arg0: i32, %arg1: i32, %arg2: i32, %arg3: i32) -> (i32, i32, i32, i32) {
    %c0_i32 = arith.constant 0 : i32
    %c0_i32_0 = arith.constant 0 : i32
    return %arg1, %arg0, %c0_i32, %arg2 : i32, i32, i32, i32
  }
}

</mosaic_0001>

<bundles_post_ra>
// kernel: tpu_custom_call.1
= control target key start
LH: loop header
LB: loop body
LE: loop exit
PB: predicated region body
PF: predicated region fallthrough
CT: control target
= control target key end

     0   :  { %s1620_s0 = inlined_call_operand.hbm [shape: f32[2,4,8,256], index: 0, kind: input, shape index: {}]   ;;  %s1621_s1 = inlined_call_operand.hbm [shape: bf16[4,256,256], index: 1, kind: input, shape index: {}]   ;;  %s1622_s2 = inlined_call_operand.hbm [shape: f32[4,1,256], index: 2, kind: input, shape index: {}]   ;;  %s1623_s3 = inlined_call_operand.hbm [shape: f32[2,4,8,256], index: 3, kind: output, shape index: {}]  }
   0x1   :  { %1638 = sst [smem:[#allocation22_spill]] %s1620_s0 }
   0x2   :  { %1639 = sst [smem:[#allocation23_spill]] %s1621_s1 }
   0x3   :  { %1640 = sst [smem:[#allocation24_spill]] %s1622_s2 }
   0x4   :  { %1641 = sst [smem:[#allocation25_spill]] %s1623_s3 }
   0x5   :  { %8 = vsyncpa [#allocation3], 0 }
   0x6   :  { %10 = vsyncpa [#allocation3 + $0x1], 0 }
   0x7   :  { %11 = vsyncpa [#allocation6], 0 }
   0x8   :  { %13 = vsyncpa [#allocation6 + $0x1], 0 }
   0x9   :  { %14 = vsyncpa [#allocation4], 0 }
   0xa   :  { %16 = vsyncpa [#allocation4 + $0x1], 0  ;;  %s1143_s12 = smov 0   ;;  %s1145_s13 = smov 0  }
   0xb   :  { %s1147_s14 = smov 0   ;;  %s1149_s15 = smov 0  }
   0xc   :  { %s1151_s16 = smov 0   ;;  %s1153_s17 = smov 0  }
   0xd   :  { %s1155_s18 = smov 0   ;;  %s1157_s19 = smov 0  }
   0xe   :  { %s1159_s20 = smov 0   ;;  %s1161_s21 = smov 0  }
   0xf   :  { %s1163_s22 = smov 0   ;;  %s1165_s23 = smov 0  }
  0x10   :  { %s1167_s24 = smov 0   ;;  %s1169_s25 = smov 0  }
  0x11   :  { %s1171_s26 = smov 0   ;;  %s1173_s27 = smov 0  }
  0x12 LB: > { %1642 = sst [smem:[#allocation13_spill]] %s1078_s20  ;;  %s37_s28 = sadd.s32 1, %s1094_s24  ;;  %s1106_s27 = sphi %s1173_s27, %s22_s27   ;;  %s1102_s26 = sphi %s1171_s26, %s1704_s26   ;;  %s1098_s25 = sphi %s1169_s25, %s1703_s25   ;;  %s1094_s24 = sphi %s1167_s24, %s1688_s24   ;;  %s1090_s23 = sphi %s1165_s23, %s1702_s23   ;;  %s1086_s22 = sphi %s1163_s22, %s1701_s22   ;;  %s1082_s21 = sphi %s1161_s21, %s1700_s21   ;;  %s1078_s20 = sphi %s1159_s20, %s1686_s20   ;;  %s1074_s19 = sphi %s1157_s19, %s1699_s19   ;;  %s1070_s18 = sphi %s1155_s18, %s1698_s18   ;;  %s1066_s17 = sphi %s1153_s17, %s1697_s17   ;;  %s1062_s16 = sphi %s1151_s16, %s1696_s16   ;;  %s1058_s15 = sphi %s1149_s15, %s1695_s15   ;;  %s1054_s14 = sphi %s1147_s14, %s1694_s14   ;;  %s1050_s13 = sphi %s1145_s13, %s1693_s13   ;;  %s1046_s12 = sphi %s1143_s12, %s1691_s12  }
  0x13   : > { %1643 = sst [smem:[#allocation14_spill]] %s1082_s21  ;;  %s40_s29 = sadd.s32 1, %s1098_s25 }
  0x14   : > { %1644 = sst [smem:[#allocation15_spill]] %s1086_s22  ;;  %p38_p0 = scmp.ge.s32.totalorder %s37_s28, 2 }
  0x15   : > { %1645 = sst [smem:[#allocation16_spill]] %s1090_s23  ;;  %s48_s30 = sadd.s32 1, %s1102_s26 }
  0x16   : > { %1646 = sst [smem:[#allocation17_spill]] %s1094_s24  ;;  %p1630_p1 = scmp.eq.s32.totalorder %s1106_s27, 0 }
  0x17   : > { %s1706_s28 = smov (%p38_p0, %s37_s28), 0  ;;  %s1708_s29 = smov (!%p38_p0, %s40_s29), %s1098_s25 }
  0x18   : > { %1647 = sst [smem:[#allocation18_spill]] %s1706_s28  ;;  %s81_s5 = ssub.s32 %s1094_s24, %s1706_s28 }
  0x19   : > { %p94_p2 = scmp.ne.s32.totalorder %s1066_s17, %s1062_s16  ;;  %p1628_p3 = scmp.ge.s32.totalorder %s1708_s29, 2 }
  0x1a   : > { %p1629_p6 = scmp.lt.s32.totalorder %s1106_s27, 16  ;;  %s206_s7 = sand.u32 1, %s1106_s27  }
  0x1b   : > { %p1242_p5 = por %p94_p2, %p1630_p1  ;;  %s1710_s30 = smov (!%p1628_p3, %s48_s30), %s1102_s26 }
  0x1c   : > { %p50_p7 = scmp.ge.s32.totalorder %s1710_s30, 4  ;;  %s208_s8 = sand.u32 1, %s1066_s17  }
  0x1d   : > { %s645_s9 = sshll.u32 %s1094_s24, 5  ;;  %s616_s10 = sshll.u32 %s208_s8, 6 }
  0x1e   : > { %s1712_s30 = smov (%p50_p7, %s1710_s30), 0  ;;  %s216_s11 = sadd.s32 %s1098_s25, %s645_s9 }
  0x1f   : > { %1649 = sst [smem:[#allocation19_spill]] %s1712_s30  ;;  %s1258_s4 = ssub.s32 %s1102_s26, %s1712_s30 }
  0x20   : > { %s1262_s28 = sor.u32 %s81_s5, %s1258_s4  ;;  %s619_s3 = sshll.u32 %s1102_s26, 6 }
  0x21   : > { %s210_s22 = scalar_lea.vmem [#allocation5], %s616_s10  ;;  %s218_s21 = sadd.s32 %s619_s3, %s216_s11 }
  0x22   : > { %s221_s23 = sshll.u32 %s210_s22, 4  ;;  %s620_s2 = sshll.u32 %s218_s21, 6  ;;  %s1265_s23 = int_to_ptr.vmem [resolvable:$true] %s221_s23 }
  0x23   : > { %p1271_p9 = pnand %p1629_p6, %p1242_p5  ;;  %s1651_s1 = sld [smem:[#allocation23_spill]] }
  0x24   : > { %p623_p10 = scmp.ge.s32.totalorder %s1106_s27, 1  ;;  %s1281_s3 = scalar_lea.sflag [#allocation6], %s206_s7 }
  0x25   : > { %p848_p12 = pneg %p1271_p9 }
  0x29   : > { %s1278_s5 = scalar_lea.hbm %s1651_s1, %s620_s2  ;;  %s851_s2 = scalar_lea.hbm %s1651_s1, 16384 }
  0x2a   : > { %s846_s21 = scalar_lea.hbm %s1278_s5, 1024  ;;  %p852_p2 = scmp.lt.u32.totalorder %s1278_s5, %s1651_s1 }
  0x2b   : > { %p847_p11 = scmp.ne.s32.totalorder %s1278_s5, %s846_s21  ;;  %p853_p5 = scmp.lt.u32.totalorder %s851_s2, %s846_s21 }
  0x2c   : > { %p855_p4 = scmp.lt.u32.totalorder %s846_s21, %s1278_s5 }
  0x2d   : > { %p849_p13 = pnand %p848_p12, %p847_p11  ;;  %p854_p7 = por %p853_p5, %p852_p2 }
  0x2f   : > { %p850_p0 = pneg %p849_p13  ;;  %p856_p3 = por %p855_p4, %p854_p7 }
  0x31   : > { %p857_p6 = pnand %p856_p3, %p850_p0 }
  0x33   : > { %860 = shalt.err (!%p857_p6)
}
  0x34   : > { %s861_s7 = scalar_lea.vmem %s1265_s23, 1024  ;;  %s1108_s8 = smov [#allocation5]  }
  0x35   : > { %p862_p11 = scmp.ne.s32.totalorder %s1265_s23, %s861_s7  ;;  %s866_s9 = sshll.u32 %s1108_s8, 4  ;;  %s867_s9 = int_to_ptr.vmem [resolvable:$false] %s866_s9 }
  0x36   : > { %s868_s22 = scalar_lea.vmem %s867_s9, 2048  ;;  %p869_p8 = scmp.lt.s32.totalorder %s1265_s23, %s867_s9 }
  0x37   : > { %p864_p13 = pnand %p862_p11, %p848_p12  ;;  %p870_p2 = scmp.lt.s32.totalorder %s868_s22, %s861_s7 }
  0x39   : > { %p865_p1 = pneg %p864_p13  ;;  %p871_p5 = por %p870_p2, %p869_p8 }
  0x3b   : > { %p872_p4 = pnand %p871_p5, %p865_p1 }
  0x3d   : > { %875 = shalt.err (!%p872_p4)
}
  0x3e   : > { %s1109_s21 = smov 128   ;;  %s1110_s6 = smov 64  }
  0x3f   : > { %s1111_s2 = smov 4   ;;  %p248_p1 = scmp.lt.s32.totalorder %s1106_s27, 17 }
  0x40   : > { %689 = dma.hbm_to_vmem [thread:$0]  (!%p1271_p9), %s1278_s5, 1024, %s1265_s23, %s1281_s3, %s1109_s21, %s1110_s6, %s1111_s2  }
  0x41   : > { %p1312_p3 = pnand %p623_p10, %p248_p1  ;;  %s57_s11 = sadd.s32 1, %s1078_s20 }
  0x42   : > { %p64_p6 = scmp.ne.s32.totalorder %s1078_s20, %s1074_s19  ;;  %p1653_p8 = scmp.eq.s32.totalorder %s1258_s4, 0 }
  0x43   : > { %p1655_p12 = scmp.eq.s32.totalorder %s1106_s27, 0  ;;  %s182_s8 = sand.u32 1, %s1078_s20  }
  0x44   : > { %s1322_s7 = scalar_select %p1653_p8, %s1078_s20, %s57_s11  }
  0x45   : > { %p66_p0 = por %p1655_p12, %p64_p6  ;;  %s644_s9 = sshll.u32 %s1102_s26, 8 }
  0x46   : > { %1654 = sst [smem:[#allocation20_spill]] %s1322_s7  ;;  %s613_s22 = sshll.u32 %s182_s8, 5 }
  0x47   : > { %s1656_s0 = sld [smem:[#allocation22_spill]]  ;;  %s186_s5 = scalar_lea.vmem [#allocation2], %s613_s22 }
  0x48   : > { %s196_s21 = sshll.u32 %s186_s5, 4  ;;  %p1657_p9 = scmp.lt.s32.totalorder %s1106_s27, 16  ;;  %s1341_s21 = int_to_ptr.vmem [resolvable:$true] %s196_s21 }
  0x49   : > { %s1343_s2 = scalar_lea.sflag [#allocation3], %s182_s8 }
  0x4a   : > { %p1337_p10 = pnand %p1657_p9, %p66_p0 }
  0x4c   : > { %p878_p13 = pneg %p1337_p10 }
  0x4d   : > { %s1333_s23 = scalar_lea.hbm %s1656_s0, %s644_s9  ;;  %s881_s22 = scalar_lea.hbm %s1656_s0, 2048 }
  0x4e   : > { %s876_s1 = scalar_lea.hbm %s1333_s23, 512  ;;  %p882_p4 = scmp.lt.u32.totalorder %s1333_s23, %s1656_s0 }
  0x4f   : > { %p877_p11 = scmp.ne.s32.totalorder %s1333_s23, %s876_s1  ;;  %p883_p1 = scmp.lt.u32.totalorder %s881_s22, %s876_s1 }
  0x50   : > { %p885_p8 = scmp.lt.u32.totalorder %s876_s1, %s1333_s23 }
  0x51   : > { %p879_p2 = pnand %p878_p13, %p877_p11  ;;  %p884_p6 = por %p883_p1, %p882_p4 }
  0x53   : > { %p880_p5 = pneg %p879_p2  ;;  %p886_p12 = por %p885_p8, %p884_p6 }
  0x55   : > { %p887_p0 = pnand %p886_p12, %p880_p5 }
  0x57   : > { %890 = shalt.err (!%p887_p0)
}
  0x58   : > { %s891_s8 = scalar_lea.vmem %s1341_s21, 512  ;;  %s1112_s11 = smov [#allocation2]  }
  0x59   : > { %p892_p9 = scmp.ne.s32.totalorder %s1341_s21, %s891_s8  ;;  %s896_s9 = sshll.u32 %s1112_s11, 4  ;;  %s897_s9 = int_to_ptr.vmem [resolvable:$false] %s896_s9 }
  0x5a   : > { %s898_s24 = scalar_lea.vmem %s897_s9, 1024  ;;  %p899_p7 = scmp.lt.s32.totalorder %s1341_s21, %s897_s9 }
  0x5b   : > { %p894_p11 = pnand %p892_p9, %p878_p13  ;;  %p900_p4 = scmp.lt.s32.totalorder %s898_s24, %s891_s8 }
  0x5d   : > { %p895_p2 = pneg %p894_p11  ;;  %p901_p1 = por %p900_p4, %p899_p7 }
  0x5f   : > { %p902_p6 = pnand %p901_p1, %p895_p2 }
  0x61   : > { %905 = shalt.err (!%p902_p6)
}
  0x62   : > { %s1113_s1 = smov 1024   ;;  %s1114_s22 = smov 256  }
  0x63   : > { %s1115_s5 = smov 16   ;;  %s1372_s8 = sadd.s32 4294967295, %s1106_s27  }
  0x64   : > { %686 = dma.hbm_to_vmem [thread:$0]  (!%p1337_p10), %s1333_s23, 512, %s1341_s21, %s1343_s2, %s1113_s1, %s1114_s22, %s1115_s5  }
  0x65   : > { %s610_s11 = sadd.s32 4294967294, %s1106_s27   ;;  %p71_p7 = scmp.eq.s32.totalorder %s1372_s8, 0 }
  0x66   : > { %p1659_p13 = scmp.ge.s32.totalorder %s1708_s29, 2  ;;  %p1661_p5 = scmp.ne.s32.totalorder %s1074_s19, %s1070_s18 }
  0x67   : > { %p1663_p10 = scmp.ne.s32.totalorder %s1062_s16, %s1058_s15  ;;  %s115_s2 = sadd.s32 1, %s1054_s14 }
  0x68   : > { %s1714_s29 = smov (%p1659_p13, %s1708_s29), 0  ;;  %p1386_p8 = por %p71_p7, %p1661_p5 }
  0x69   : > { %1660 = sst [smem:[#allocation21_spill]] %s1714_s29  ;;  %p1395_p12 = por %p1663_p10, %p71_p7 }
  0x6a   : > { %s1662_s6 = scalar_select %p1386_p8, 1, 0 }
  0x6b   : > { %s1664_s23 = scalar_select %p1395_p12, 1, 0 }
  0x6c   : > { %s83_s21 = ssub.s32 %s1098_s25, %s1714_s29  ;;  %p122_p11 = scmp.ne.s32.totalorder %s1054_s14, %s1050_s13 }
  0x6d   : > { %s84_s9 = sor.u32 %s83_s21, %s1262_s28  ;;  %s112_s24 = sor.u32 %s83_s21, %s1258_s4 }
  0x6e   : > { %p85_p0 = scmp.eq.s32.totalorder %s84_s9, 0  ;;  %p113_p9 = scmp.eq.s32.totalorder %s112_s24, 0 }
  0x6f   : > { %p128_p2 = scmp.ne.s32.totalorder %s1050_s13, %s1046_s12  ;;  %s1665_s18 = sadd.s32 1, %s1066_s17 }
  0x70   : > { %s1411_s1 = scalar_select %p85_p0, %s1066_s17, %s1665_s18  }
  0x71   : > { %s1414_s15 = scalar_select %p113_p9, %s1054_s14, %s115_s2  }
  0x72   : > { %p1666_p4 = scmp.eq.s32.totalorder %s1106_s27, 0  ;;  %p1424_p6 = por %p128_p2, %p71_p7 }
  0x73   : > { %p156_p13 = scmp.eq.s32.totalorder %s1372_s8, 15  ;;  %p162_p5 = scmp.eq.s32.totalorder %s610_s11, 15 }
  0x74   : > { %p1418_p1 = por %p122_p11, %p1666_p4  ;;  %s233_s4 = sand.u32 1, %s1054_s14  }
  0x75   : > { %s1668_s28 = scalar_select %p1424_p6, 1, 0 }
  0x76   : > { %s621_s5 = sshll.u32 %s1102_s26, 1  ;;  %p1431_p10 = por %p156_p13, %p122_p11 }
  0x77   : > { %p1435_p0 = por %p162_p5, %p128_p2  ;;  %s239_s9 = sadd.s32 %s1098_s25, %s621_s5 }
  0x78   : > { %s1669_s21 = scalar_select %p1431_p10, 1, 0 }
  0x79   : > { %s1670_s2 = scalar_select %p1435_p0, 1, 0 }
  0x7a   : > { %s622_s24 = sshll.u32 %s239_s9, 4  ;;  %s234_s18 = scalar_lea.vmem [#allocation7], %s233_s4 }
  0x7b   : > { %s243_s0 = sshll.u32 %s234_s18, 4  ;;  %s1671_s7 = sld [smem:[#allocation24_spill]]  ;;  %s1445_s0 = int_to_ptr.vmem [resolvable:$true] %s243_s0 }
  0x7c   : > { %p1672_p7 = scmp.lt.s32.totalorder %s1106_s27, 16 }
  0x7e   : > { %p1451_p9 = pnand %p1672_p7, %p1418_p1 }
  0x80   : > { %p908_p2 = pneg %p1451_p9 }
  0x81   : > { %s1443_s20 = scalar_lea.hbm %s1671_s7, %s622_s24  ;;  %s911_s5 = scalar_lea.hbm %s1671_s7, 128 }
  0x82   : > { %s906_s4 = scalar_lea.hbm %s1443_s20, 16  ;;  %p912_p1 = scmp.lt.u32.totalorder %s1443_s20, %s1671_s7 }
  0x83   : > { %p907_p11 = scmp.ne.s32.totalorder %s1443_s20, %s906_s4  ;;  %p913_p5 = scmp.lt.u32.totalorder %s911_s5, %s906_s4 }
  0x84   : > { %p915_p0 = scmp.lt.u32.totalorder %s906_s4, %s1443_s20 }
  0x85   : > { %p909_p4 = pnand %p908_p2, %p907_p11  ;;  %p914_p7 = por %p913_p5, %p912_p1 }
  0x87   : > { %p910_p13 = pneg %p909_p4  ;;  %p916_p10 = por %p915_p0, %p914_p7 }
  0x89   : > { %p917_p6 = pnand %p916_p10, %p910_p13 }
  0x8b   : > { %920 = shalt.err (!%p917_p6)
}
  0x8c   : > { %s921_s24 = scalar_lea.vmem %s1445_s0, 16  ;;  %s1116_s18 = smov [#allocation7]  }
  0x8d   : > { %p922_p11 = scmp.ne.s32.totalorder %s1445_s0, %s921_s24  ;;  %s926_s29 = sshll.u32 %s1116_s18, 4  ;;  %s927_s29 = int_to_ptr.vmem [resolvable:$false] %s926_s29 }
  0x8e   : > { %s928_s30 = scalar_lea.vmem %s927_s29, 32  ;;  %p929_p8 = scmp.lt.s32.totalorder %s1445_s0, %s927_s29 }
  0x8f   : > { %p924_p4 = pnand %p922_p11, %p908_p2  ;;  %p930_p1 = scmp.lt.s32.totalorder %s928_s30, %s921_s24 }
  0x91   : > { %p925_p12 = pneg %p924_p4  ;;  %p931_p5 = por %p930_p1, %p929_p8 }
  0x93   : > { %p932_p0 = pnand %p931_p5, %p925_p12 }
  0x95   : > { %935 = shalt.err (!%p932_p0)
}
  0x96   : > { %692 = dma.hbm_to_vmem [thread:$0]  (!%p1451_p9), %s1443_s20, 16, %s1445_s0, %s1281_s3  }
  0x97   : > { %252 = sbr.rel (%p1312_p3) target bundleno = 447 (0x1bf), region = 32  ;;  %s254_s4 = sand.u32 (!%p1312_p3), 1, %s1074_s19  }
  0x98   : > { %s1484_s5 = sshll.u32 (!%p1312_p3), %s254_s4, 5  ;;  %s255_s22 = scalar_lea.sflag (!%p1312_p3), [#allocation3], %s254_s4 }
  0x99   : > { %s258_s9 = scalar_lea.vmem (!%p1312_p3), [#allocation2], %s1484_s5  ;;  %p1674_p8 = scmp.ne.s32.totalorder (!%p1312_p3), %s1662_s6, 0 }
  0x9e   : > { %1029 = dma.done.wait (%p1674_p8), %s255_s22, 512  }
  0x9f   : > { %1031 = vsyncadd (%p1674_p8), %s255_s22, 4294966784  ;;  %s263_s0 = sand.u32 1, %s1372_s8   ;;  %s265_s20 = sand.u32 1, %s1062_s16  }
  0xa0   : > { %s625_s3 = sshll.u32 %s265_s20, 6  ;;  %s264_s10 = scalar_lea.sflag [#allocation6], %s263_s0 }
  0xa1   : > { %s1493_s11 = scalar_lea.vmem [#allocation5], %s625_s3  ;;  %p1675_p3 = scmp.ne.s32.totalorder %s1664_s23, 0 }
  0xa3   : > { %1033 = dma.done.wait (%p1675_p3), %s264_s10, 1024  }
  0xa4   : > { %1035 = vsyncadd (%p1675_p3), %s264_s10, 4294966272  ;;  %s1500_s24 = sand.u32 1, %s1050_s13   ;;  %p1676_p12 = scmp.ne.s32.totalorder %s1668_s28, 0 }
  0xa5   : > { %s275_s6 = scalar_lea.vmem [#allocation7], %s1500_s24 }
  0xa6   : > { %1037 = dma.done.wait (%p1676_p12), %s264_s10, 16  }
  0xa7   : > { %1039 = vsyncadd (%p1676_p12), %s264_s10, 4294967280  ;;  %s626_s8 = sshll.u32 %s1500_s24, 4  ;;  %s1677_s29 = sld [smem:[#allocation14_spill]] }
  0xa8   : > { %s1508_s18 = scalar_lea.vmem [#allocation8], %s626_s8 }
  0xad   : > { %p627_p6 = scmp.ne.s32.totalorder %s1677_s29, 0 }
  0xae   : > { %v628_v0 = vld [vmem:[%s275_s6] ss:$0 sm:$0xff] (!%p627_p6) }
  0xaf   : > { %314 = sbr.rel (%p627_p6) target bundleno = 182 (0xb6), region = 48  ;;  %322 = vst [vmem:[%s1508_s18] sm:$0xff] (!%p627_p6), %v628_v0  ;;  %323 = vst [vmem:[%s1508_s18 + $0x8] sm:$0xff] (!%p627_p6), %v628_v0 }
  0xb6 PF: > { %v838_v1 = vld [vmem:[%s1493_s11] sm:$0xff]   ;;  %s1678_s23 = sld [smem:[#allocation14_spill]]  ;;  %v1117_v2 = vmov 0.0   ;;  %v839_v3 = vld [vmem:[%s1493_s11 + $0x8] sm:$0xff]   ;;  %vm1118_vm0 = vmmov 0   ;;  %v840_v4 = vld [vmem:[%s1493_s11 + $0x10] sm:$0xff]  }
  0xb7   : > { %655 = vmatprep.subr.bf16.mxu0 %v1117_v2  ;;  %671 = vmatprep.mubr.msk.bf16.mxu0 %vm1118_vm0, %v1117_v2  ;;  %v841_v5 = vld [vmem:[%s1493_s11 + $0x18] sm:$0xff]   ;;  %v842_v6 = vld [vmem:[%s1493_s11 + $0x20] sm:$0xff]   ;;  %s1679_s4 = sld [smem:[#allocation16_spill]]  ;;  %v843_v7 = vld [vmem:[%s1493_s11 + $0x28] sm:$0xff]   ;;  %s1680_s22 = sld [smem:[#allocation15_spill]] }
  0xb8   : > { %656 = vmatpush3.bf16.msra.mxu0 %v838_v1  ;;  %v844_v8 = vld [vmem:[%s1493_s11 + $0x30] sm:$0xff]   ;;  %v845_v9 = vld [vmem:[%s1493_s11 + $0x38] sm:$0xff]   ;;  %s461_s8 = sshll.u32 %s1508_s18, 4  ;;  %s1681_s11 = sld [smem:[#allocation25_spill]]  ;;  %s1534_s8 = int_to_ptr.vmem [resolvable:$true] %s461_s8 }
  0xb9   : > { %657 = vmatprep.subr.bf16.mxu0 %v1117_v2  ;;  %v332_v13 = vld [vmem:[%s1508_s18] sm:$0xff]  ;;  %v333_v15 = vld [vmem:[%s1508_s18 + $0x8] sm:$0xff]  ;;  %p1682_p9 = scmp.ne.s32.totalorder %s1669_s21, 0 }
  0xbc   : > { %658 = vmatpush3.bf16.msra.mxu0 %v839_v3  ;;  %s629_s28 = sshll.u32 %s1678_s23, 7  ;;  %s444_s23 = scalar_lea.sflag [#allocation4], %s1500_s24 }
  0xbd   : > { %659 = vmatprep.subr.bf16.mxu0 %v1117_v2  ;;  %s325_s30 = sshra.s32 %s629_s28, 7  ;;  %s640_s3 = sshll.u32 %s1679_s4, 1 }
  0xbe   : > { %s630_s0 = sshll.u32 %s325_s30, 3  ;;  %s456_s10 = sadd.s32 %s1680_s22, %s640_s3 }
  0xbf   : > { %s328_s20 = scalar_lea.vmem %s258_s9, %s630_s0 [#allocation2]  ;;  %s641_s6 = sshll.u32 %s456_s10, 7 }
  0xc0   : > { %660 = vmatpush3.bf16.msra.mxu0 %v840_v4  ;;  %v329_v10 = vld [vmem:[%s328_s20] sm:$0xff]  ;;  %v330_v11 = vld [vmem:[%s328_s20 + $0x10] sm:$0xff]  ;;  %s1532_s29 = scalar_lea.hbm %s1681_s11, %s641_s6  ;;  %s936_s28 = scalar_lea.vmem %s1534_s8, 256 }
  0xc1   : > { %661 = vmatprep.subr.bf16.mxu0 %v1117_v2  ;;  %v331_v12 = vpack.c.bf16 %v330_v11, %v329_v10  ;;  %p937_p10 = scmp.ne.s32.totalorder %s1534_s8, %s936_s28  ;;  %s1119_s30 = smov [#allocation8]  }
  0xc2   : > { %s940_s4 = sshll.u32 %s1119_s30, 4  ;;  %s941_s4 = int_to_ptr.vmem [resolvable:$false] %s940_s4 }
  0xc3   : > { %p938_p2 = pnand %p937_p10, %p1682_p9  ;;  %s942_s22 = scalar_lea.vmem %s941_s4, 512 }
  0xc4   : > { %662 = vmatpush3.bf16.msra.mxu0 %v841_v5  ;;  %p943_p7 = scmp.lt.s32.totalorder %s1534_s8, %s941_s4  ;;  %p944_p11 = scmp.lt.s32.totalorder %s942_s22, %s936_s28 }
  0xc5   : > { %663 = vmatprep.subr.bf16.mxu0 %v1117_v2  ;;  %p939_p13 = pneg %p938_p2 }
  0xc6   : > { %p945_p4 = por %p944_p11, %p943_p7 }
  0xc8   : > { %664 = vmatpush3.bf16.msra.mxu0 %v842_v6  ;;  %p946_p1 = pnand %p945_p4, %p939_p13 }
  0xc9   : > { %665 = vmatprep.subr.bf16.mxu0 %v1117_v2 }
  0xcc   : > { %666 = vmatpush3.bf16.msra.mxu0 %v843_v7 }
  0xcd   : > { %667 = vmatprep.subr.bf16.mxu0 %v1117_v2 }
  0xd0   : > { %668 = vmatpush3.bf16.msra.mxu0 %v844_v8 }
  0xd1   : > { %669 = vmatprep.subr.bf16.mxu0 %v1117_v2 }
  0xd4   : > { %670 = vmatpush3.bf16.msra.mxu0 %v845_v9 }
  0xd7   : > { %672 = vmatmul.mubr.bf16.vlgmr.msra.gmra.mrb[0].mxu0 %v331_v12 }
 0x1aa   : > { %v432_v14 = vpop.f32.mrb[0].mxu0 }
 0x1ab   : > { %v439_v16 = vadd.f32 %v432_v14, %v332_v13  ;;  %v673_v17 = vpop.f32.mrb[1].mxu0 }
 0x1ac   : > { %v435_v18 = vpop.f32.mrb[2].mxu0 }
 0x1ad   : > { %441 = vst [vmem:[%s1508_s18] sm:$0xff] %v439_v16  ;;  %v440_v19 = vadd.f32 %v435_v18, %v333_v15  ;;  %v674_v20 = vpop.f32.mrb[3].mxu0 }
 0x1af   : > { %442 = vst [vmem:[%s1508_s18 + $0x8] sm:$0xff] %v440_v19 }
 0x1b0   : > { %949 = shalt.err (!%p946_p1)
}
 0x1b1   : > { %s950_s18 = scalar_lea.hbm %s1532_s29, 256  ;;  %s954_s3 = scalar_lea.hbm %s1681_s11, 2048 }
 0x1b2   : > { %p951_p5 = scmp.ne.s32.totalorder %s1532_s29, %s950_s18  ;;  %p955_p3 = scmp.lt.u32.totalorder %s1532_s29, %s1681_s11 }
 0x1b3   : > { %p956_p12 = scmp.lt.u32.totalorder %s954_s3, %s950_s18  ;;  %p958_p10 = scmp.lt.u32.totalorder %s950_s18, %s1532_s29 }
 0x1b4   : > { %p952_p0 = pnand %p951_p5, %p1682_p9 }
 0x1b5   : > { %p957_p6 = por %p956_p12, %p955_p3 }
 0x1b6   : > { %p953_p8 = pneg %p952_p0 }
 0x1b7   : > { %p959_p2 = por %p958_p10, %p957_p6 }
 0x1b9   : > { %p960_p13 = pnand %p959_p2, %p953_p8 }
 0x1bb   : > { %963 = shalt.err (!%p960_p13)
}
 0x1bc   : > { %s1120_s5 = smov 128   ;;  %s1121_s9 = smov 1024  }
 0x1bd   : > { %s1122_s28 = smov 8  }
 0x1be   : > { %681 = dma.vmem_to_hbm [thread:$0]  (%p1682_p9), %s1534_s8, 256, %s1532_s29, %s444_s23, %s1120_s5, %s1121_s9, %s1122_s28  }
 0x1bf PF: > { %p698_p7 = scmp.ge.s32.totalorder %s1106_s27, 2  ;;  %s476_s30 = sand.u32 1, %s1046_s12  }
 0x1c0   : > { %p1683_p11 = scmp.ne.s32.totalorder %s1670_s2, 0  ;;  %s477_s4 = scalar_lea.sflag [#allocation4], %s476_s30 }
 0x1c2   : > { %p694_p4 = pnand %p698_p7, %p1683_p11 }
 0x1c4   : > { %1041 = dma.done.wait (!%p694_p4), %s477_s4, 256  }
 0x1c5   : > { %1043 = vsyncadd (!%p694_p4), %s477_s4, 4294967040  ;;  %s22_s27 = sadd.s32 1, %s1106_s27   ;;  %s1685_s21 = sld [smem:[#allocation13_spill]] }
 0x1c6   : > { %p1567_p1 = scmp.ge.s32.totalorder %s22_s27, 18   ;;  %s1686_s20 = sld [smem:[#allocation20_spill]] }
 0x1c7   : > { %s1687_s2 = sld [smem:[#allocation17_spill]]  ;;  %s1688_s24 = sld [smem:[#allocation18_spill]] }
 0x1c8   : > { %s1689_s8 = sld [smem:[#allocation21_spill]]  ;;  %s1690_s29 = sld [smem:[#allocation19_spill]] }
 0x1c9   : > { %s1691_s12 = smov %s1050_s13  ;;  %s1693_s13 = smov %s1054_s14 }
 0x1ca   : > { %s1694_s14 = smov %s1414_s15  ;;  %s1695_s15 = smov %s1062_s16 }
 0x1cb   : > { %s1696_s16 = smov %s1066_s17  ;;  %s1697_s17 = smov %s1411_s1 }
 0x1cc   : > { %s1698_s18 = smov %s1074_s19  ;;  %s1699_s19 = smov %s1685_s21 }
 0x1cd   : > { %s1700_s21 = smov %s1687_s2  ;;  %s1701_s22 = smov %s1098_s25 }
 0x1ce   : > { %s1702_s23 = smov %s1102_s26  ;;  %s1703_s25 = smov %s1689_s8 }
 0x1cf   : > { %s1704_s26 = smov %s1690_s29  ;;  %21 = sbr.rel (!%p1567_p1) target bundleno = 18 (0x12), region = 106 }
 0x1d6   :  { %482 = vsyncpa [#allocation3], 1 }
 0x1d7   :  { %484 = vsyncpa [#allocation3 + $0x1], 1 }
 0x1d8   :  { %485 = vsyncpa [#allocation6], 1 }
 0x1d9   :  { %487 = vsyncpa [#allocation6 + $0x1], 1 }
 0x1da   :  { %488 = vsyncpa [#allocation4], 1 }
 0x1db   :  { %490 = vsyncpa [#allocation4 + $0x1], 1 }

</bundles_post_ra>
